<compile_context>
chip_gen: v6e
topology: v6e:2x2x1
jax: 0.10.0
libtpu: 0.0.40
codegen_flags: <defaults>
</compile_context>

<pallas_src>
import functools

import jax
import jax.numpy as jnp
from jax.experimental import pallas as pl
from jax.experimental.pallas import tpu as pltpu


# ----------------------------------------------------------------------------
# Pallas kernel
# ----------------------------------------------------------------------------
def _yolo_loss_kernel(pred_ref, tgt_ref, out_ref, *, l_coord, l_noobj, n_cls):
    """One grid step processes a (30, R, 128) channel-major slab of cells and
    writes a lane-dense (1, 1, 128) partial sum for this block."""

    tconf0 = tgt_ref[4]                        # (R, 128) target conf, slot 0
    coo = tconf0 > 0.0                         # cells containing an object
    noo = tconf0 == 0.0                        # cells with no object
    coo_f = coo.astype(jnp.float32)
    noo_f = noo.astype(jnp.float32)

    # ---- no-object confidence loss (channels 4 and 9) -----------------------
    pc0 = pred_ref[4]
    pc1 = pred_ref[9]
    tc1 = tgt_ref[9]
    noo_elem = noo_f * ((pc0 - tconf0) ** 2 + (pc1 - tc1) ** 2)

    # ---- predicted boxes & target boxes --------------------------------------
    px0, py0, pw0, ph0 = pred_ref[0], pred_ref[1], pred_ref[2], pred_ref[3]
    px1, py1, pw1, ph1 = pred_ref[5], pred_ref[6], pred_ref[7], pred_ref[8]
    tx0, ty0, tw0, th0 = tgt_ref[0], tgt_ref[1], tgt_ref[2], tgt_ref[3]
    tx1, ty1, tw1, th1 = tgt_ref[5], tgt_ref[6], tgt_ref[7], tgt_ref[8]

    def to_xyxy(x, y, w, h):
        cx = x * (1.0 / 14.0)                  # hard-coded 14.0, as in PyTorch
        cy = y * (1.0 / 14.0)
        return cx - 0.5 * w, cy - 0.5 * h, cx + 0.5 * w, cy + 0.5 * h

    gx1, gy1, gx2, gy2 = to_xyxy(tx0, ty0, tw0, th0)   # IoU target = slot 0
    ga = (gx2 - gx1) * (gy2 - gy1)

    def iou(bx, by, bw, bh):
        bx1, by1, bx2, by2 = to_xyxy(bx, by, bw, bh)
        iw = jnp.maximum(jnp.minimum(bx2, gx2) - jnp.maximum(bx1, gx1), 0.0)
        ih = jnp.maximum(jnp.minimum(by2, gy2) - jnp.maximum(by1, gy1), 0.0)
        inter = iw * ih
        ba = (bx2 - bx1) * (by2 - by1)
        denom = jnp.where(coo, ba + ga - inter, 1.0)   # div-safe when masked
        return inter / denom

    iou0 = iou(px0, py0, pw0, ph0)
    iou1 = iou(px1, py1, pw1, ph1)
    resp0 = iou0 >= iou1                 # torch max -> first index on ties
    max_iou = jnp.maximum(iou0, iou1)    # TODO(synk): original detaches this
                                         # (irrelevant for forward-only)

    sel = lambda a, b: jnp.where(resp0, a, b)
    rpx, rpy = sel(px0, px1), sel(py0, py1)
    rpw, rph, rpc = sel(pw0, pw1), sel(ph0, ph1), sel(pc0, pc1)
    rtx, rty = sel(tx0, tx1), sel(ty0, ty1)
    rtw, rth = sel(tw0, tw1), sel(th0, th1)
    nrpc = jnp.where(resp0, pc1, pc0)    # non-responsible pred confidence

    contain_elem = (rpc - max_iou) ** 2
    not_contain_elem = nrpc * nrpc       # target conf forced to 0

    sw = lambda v: jnp.sqrt(jnp.where(coo, v, 1.0))   # NaN-safe when masked
    loc_elem = ((rpx - rtx) ** 2 + (rpy - rty) ** 2
                + (sw(rpw) - sw(rtw)) ** 2 + (sw(rph) - sw(rth)) ** 2)

    # ---- class loss (channels 10..29): pure VPU adds, one channel at a time
    # (keeps the live vreg set small; spills stay hidden under the HBM DMA) ---
    cls_elem = jnp.zeros_like(coo_f)
    for c in range(10, 10 + n_cls):
        d = pred_ref[c] - tgt_ref[c]
        cls_elem = cls_elem + d * d

    # ---- combine per element, single cross-sublane reduce per block ----------
    loss_elem = (coo_f * (l_coord * loc_elem + 2.0 * contain_elem
                          + not_contain_elem + cls_elem)
                 + l_noobj * noo_elem)                       # (R, 128)

    out_ref[...] = jnp.sum(loss_elem, axis=0,
                           keepdims=True).reshape(out_ref.shape)


# ----------------------------------------------------------------------------
# Wrapper
# ----------------------------------------------------------------------------
@functools.partial(jax.jit, static_argnums=(2, 3, 4, 5, 6))
def _yolo_loss_impl(pred, target, S, B, l_coord, l_noobj, cells_per_block):
    C = B * 5 + 20                     # 30
    N = pred.shape[0]
    lanes = 128
    M = N * S * S

    G = pl.cdiv(M, lanes)              # number of 128-cell rows
    R = max(1, cells_per_block // lanes)
    if G <= R:
        R = G                          # single full-array block
    else:
        R = max(8, (R // 8) * 8)       # keep sublane block dim a multiple of 8
    num_blocks = pl.cdiv(G, R)
    M_pad = num_blocks * R * lanes

    # Channel-major (C, num_blocks*R, 128): cells on (sublane, lane), channels
    # on the leading axis.  Transpose+pad is an XLA op fused with the
    # pallas_call under this jit.  Zero-padded cells are "noo" cells that
    # contribute exactly zero to the loss.
    # TODO(synk): have the producer emit channel-major activations directly to
    # avoid this extra HBM round-trip entirely.
    def prep(x):
        x = x.reshape(M, C).astype(jnp.float32)
        if M_pad != M:
            x = jnp.pad(x, ((0, M_pad - M), (0, 0)))
        return x.T.reshape(C, num_blocks * R, lanes)

    p, t = prep(pred), prep(target)

    kernel = functools.partial(_yolo_loss_kernel, l_coord=float(l_coord),
                               l_noobj=float(l_noobj), n_cls=C - 10)

    # Advisory cost hint for XLA's scheduler around the custom call.
    cost = pl.CostEstimate(
        flops=int(130 * M_pad),
        transcendentals=int(6 * M_pad),
        bytes_accessed=int(2 * C * M_pad * 4 + num_blocks * lanes * 4),
    )

    partials = pl.pallas_call(
        kernel,
        out_shape=jax.ShapeDtypeStruct((num_blocks, 1, lanes), jnp.float32),
        grid=(num_blocks,),
        in_specs=[pl.BlockSpec((C, R, lanes), lambda i: (0, i, 0)),
                  pl.BlockSpec((C, R, lanes), lambda i: (0, i, 0))],
        out_specs=pl.BlockSpec((1, 1, lanes), lambda i: (i, 0, 0)),
        compiler_params=pltpu.CompilerParams(
            dimension_semantics=("parallel",)),   # shardable across TCs (v7x)
        cost_estimate=cost,
    )(p, t)

    return jnp.sum(partials) / N


def yolo_loss_pallas(pred, target, *, S=14, B=2, l_coord=5.0, l_noobj=0.5,
                     cells_per_block=16384):
    """pred, target: (N, S, S, B*5+20) float32. Returns scalar loss."""
    assert pred.shape == target.shape and pred.shape[-1] == B * 5 + 20 == 30
    return _yolo_loss_impl(pred, target, int(S), int(B), float(l_coord),
                           float(l_noobj), int(cells_per_block))


# ----------------------------------------------------------------------------
# Pure-JAX reference (same dense reformulation of the PyTorch semantics)
# ----------------------------------------------------------------------------
def yolo_loss_ref(pred, target, *, l_coord=5.0, l_noobj=0.5):
    N = pred.shape[0]
    p = pred.reshape(-1, 30).astype(jnp.float32)
    t = target.reshape(-1, 30).astype(jnp.float32)
    coo = t[:, 4] > 0
    noo = t[:, 4] == 0
    coo_f = coo.astype(jnp.float32)
    noo_f = noo.astype(jnp.float32)

    noo_loss = jnp.sum(noo_f * ((p[:, 4] - t[:, 4]) ** 2
                                + (p[:, 9] - t[:, 9]) ** 2))

    def to_xyxy(b):
        cx, cy, w, h = b[:, 0] / 14.0, b[:, 1] / 14.0, b[:, 2], b[:, 3]
        return cx - 0.5 * w, cy - 0.5 * h, cx + 0.5 * w, cy + 0.5 * h

    gx1, gy1, gx2, gy2 = to_xyxy(t[:, 0:5])
    ga = (gx2 - gx1) * (gy2 - gy1)

    def iou(b):
        bx1, by1, bx2, by2 = to_xyxy(b)
        iw = jnp.maximum(jnp.minimum(bx2, gx2) - jnp.maximum(bx1, gx1), 0.0)
        ih = jnp.maximum(jnp.minimum(by2, gy2) - jnp.maximum(by1, gy1), 0.0)
        inter = iw * ih
        ba = (bx2 - bx1) * (by2 - by1)
        return inter / jnp.where(coo, ba + ga - inter, 1.0)

    b0, b1 = p[:, 0:5], p[:, 5:10]
    g0, g1 = t[:, 0:5], t[:, 5:10]
    iou0, iou1 = iou(b0), iou(b1)
    resp0 = iou0 >= iou1
    max_iou = jnp.maximum(iou0, iou1)
    rp = jnp.where(resp0[:, None], b0, b1)
    rt = jnp.where(resp0[:, None], g0, g1)
    nrp = jnp.where(resp0[:, None], b1, b0)

    contain = jnp.sum(coo_f * (rp[:, 4] - max_iou) ** 2)
    not_contain = jnp.sum(coo_f * nrp[:, 4] ** 2)
    sw = lambda v: jnp.sqrt(jnp.where(coo, v, 1.0))
    loc = jnp.sum(coo_f * ((rp[:, 0] - rt[:, 0]) ** 2
                           + (rp[:, 1] - rt[:, 1]) ** 2
                           + (sw(rp[:, 2]) - sw(rt[:, 2])) ** 2
                           + (sw(rp[:, 3]) - sw(rt[:, 3])) ** 2))
    cls = jnp.sum(coo_f[:, None] * (p[:, 10:] - t[:, 10:]) ** 2)

    return (l_coord * loc + 2.0 * contain + not_contain
            + l_noobj * noo_loss + cls) / N


# ----------------------------------------------------------------------------
if __name__ == "__main__":
    key = jax.random.PRNGKey(0)
    k_pred, k_obj, k_box, k_cls = jax.random.split(key, 4)

    N, S, B = 2, 14, 2
    C = B * 5 + 20  # 30

    # pred: positive values so sqrt(w), sqrt(h) are well-defined (as in YOLO)
    pred = jax.random.uniform(k_pred, (N, S, S, C), dtype=jnp.float32,
                              minval=0.05, maxval=0.95)

    # target: ~20% of cells contain an object; object cells carry a duplicated
    # box in slots 0:5 and 5:10 with confidence 1, plus 20 class scores.
    obj = (jax.random.uniform(k_obj, (N, S, S)) < 0.2).astype(jnp.float32)
    box = jax.random.uniform(k_box, (N, S, S, 4), dtype=jnp.float32,
                             minval=0.1, maxval=0.9)
    cls = jax.random.uniform(k_cls, (N, S, S, 20), dtype=jnp.float32)
    tbox = jnp.concatenate([box, jnp.ones((N, S, S, 1), jnp.float32)], axis=-1)
    target = jnp.concatenate([tbox, tbox, cls], axis=-1) * obj[..., None]

    loss = yolo_loss_pallas(pred, target, S=S, B=B, l_coord=5.0, l_noobj=0.5)
    loss = jax.block_until_ready(loss)

    ref = yolo_loss_ref(pred, target, l_coord=5.0, l_noobj=0.5)
    assert jnp.isfinite(loss), "loss is not finite"
    assert jnp.allclose(loss, ref, rtol=1e-4, atol=1e-4), (loss, ref)

    print("KERNEL_OK")
</pallas_src>

<mosaic_0001>
module attributes {stable_mosaic.version = 11 : i64} {
  func.func @_yolo_loss_kernel(%arg0: i32, %arg1: memref<30x4x128xf32, #tpu.memory_space<vmem>>, %arg2: memref<30x4x128xf32, #tpu.memory_space<vmem>>, %arg3: memref<1x1x128xf32, #tpu.memory_space<vmem>>) attributes {dimension_semantics = [#tpu.dimension_semantics<parallel>], iteration_bounds = array<i64: 1>, scalar_prefetch = 0 : i64, scratch_operands = 0 : i64, tpu.core_type = #tpu.core_type<tc>, window_params = [{transform_indices = @transform_0, window_bounds = array<i64: 30, 4, 128>}, {transform_indices = @transform_1, window_bounds = array<i64: 30, 4, 128>}, {transform_indices = @transform_2, window_bounds = array<i64: 1, 1, 128>}]} {
    %c4 = arith.constant 4 : index
    %c0 = arith.constant 0 : index
    %c0_0 = arith.constant 0 : index
    %0 = vector.load %arg2[%c4, %c0, %c0_0] : memref<30x4x128xf32, #tpu.memory_space<vmem>>, vector<1x4x128xf32>
    %1 = vector.shape_cast %0 : vector<1x4x128xf32> to vector<4x128xf32>
    %cst = arith.constant 0.000000e+00 : f32
    %2 = vector.broadcast %cst : f32 to vector<4x128xf32>
    %3 = arith.cmpf ogt, %1, %2 : vector<4x128xf32>
    %cst_1 = arith.constant 0.000000e+00 : f32
    %4 = vector.broadcast %cst_1 : f32 to vector<4x128xf32>
    %5 = arith.cmpf oeq, %1, %4 : vector<4x128xf32>
    %6 = arith.extui %3 : vector<4x128xi1> to vector<4x128xi32>
    %7 = arith.sitofp %6 : vector<4x128xi32> to vector<4x128xf32>
    %8 = arith.extui %5 : vector<4x128xi1> to vector<4x128xi32>
    %9 = arith.sitofp %8 : vector<4x128xi32> to vector<4x128xf32>
    %c4_2 = arith.constant 4 : index
    %c0_3 = arith.constant 0 : index
    %c0_4 = arith.constant 0 : index
    %10 = vector.load %arg1[%c4_2, %c0_3, %c0_4] : memref<30x4x128xf32, #tpu.memory_space<vmem>>, vector<1x4x128xf32>
    %11 = vector.shape_cast %10 : vector<1x4x128xf32> to vector<4x128xf32>
    %c9 = arith.constant 9 : index
    %c0_5 = arith.constant 0 : index
    %c0_6 = arith.constant 0 : index
    %12 = vector.load %arg1[%c9, %c0_5, %c0_6] : memref<30x4x128xf32, #tpu.memory_space<vmem>>, vector<1x4x128xf32>
    %13 = vector.shape_cast %12 : vector<1x4x128xf32> to vector<4x128xf32>
    %c9_7 = arith.constant 9 : index
    %c0_8 = arith.constant 0 : index
    %c0_9 = arith.constant 0 : index
    %14 = vector.load %arg2[%c9_7, %c0_8, %c0_9] : memref<30x4x128xf32, #tpu.memory_space<vmem>>, vector<1x4x128xf32>
    %15 = vector.shape_cast %14 : vector<1x4x128xf32> to vector<4x128xf32>
    %16 = arith.subf %11, %1 : vector<4x128xf32>
    %17 = arith.mulf %16, %16 : vector<4x128xf32>
    %18 = arith.subf %13, %15 : vector<4x128xf32>
    %19 = arith.mulf %18, %18 : vector<4x128xf32>
    %20 = arith.addf %17, %19 : vector<4x128xf32>
    %21 = arith.mulf %9, %20 : vector<4x128xf32>
    %c0_10 = arith.constant 0 : index
    %c0_11 = arith.constant 0 : index
    %c0_12 = arith.constant 0 : index
    %22 = vector.load %arg1[%c0_10, %c0_11, %c0_12] : memref<30x4x128xf32, #tpu.memory_space<vmem>>, vector<1x4x128xf32>
    %23 = vector.shape_cast %22 : vector<1x4x128xf32> to vector<4x128xf32>
    %c1 = arith.constant 1 : index
    %c0_13 = arith.constant 0 : index
    %c0_14 = arith.constant 0 : index
    %24 = vector.load %arg1[%c1, %c0_13, %c0_14] : memref<30x4x128xf32, #tpu.memory_space<vmem>>, vector<1x4x128xf32>
    %25 = vector.shape_cast %24 : vector<1x4x128xf32> to vector<4x128xf32>
    %c2 = arith.constant 2 : index
    %c0_15 = arith.constant 0 : index
    %c0_16 = arith.constant 0 : index
    %26 = vector.load %arg1[%c2, %c0_15, %c0_16] : memref<30x4x128xf32, #tpu.memory_space<vmem>>, vector<1x4x128xf32>
    %27 = vector.shape_cast %26 : vector<1x4x128xf32> to vector<4x128xf32>
    %c3 = arith.constant 3 : index
    %c0_17 = arith.constant 0 : index
    %c0_18 = arith.constant 0 : index
    %28 = vector.load %arg1[%c3, %c0_17, %c0_18] : memref<30x4x128xf32, #tpu.memory_space<vmem>>, vector<1x4x128xf32>
    %29 = vector.shape_cast %28 : vector<1x4x128xf32> to vector<4x128xf32>
    %c5 = arith.constant 5 : index
    %c0_19 = arith.constant 0 : index
    %c0_20 = arith.constant 0 : index
    %30 = vector.load %arg1[%c5, %c0_19, %c0_20] : memref<30x4x128xf32, #tpu.memory_space<vmem>>, vector<1x4x128xf32>
    %31 = vector.shape_cast %30 : vector<1x4x128xf32> to vector<4x128xf32>
    %c6 = arith.constant 6 : index
    %c0_21 = arith.constant 0 : index
    %c0_22 = arith.constant 0 : index
    %32 = vector.load %arg1[%c6, %c0_21, %c0_22] : memref<30x4x128xf32, #tpu.memory_space<vmem>>, vector<1x4x128xf32>
    %33 = vector.shape_cast %32 : vector<1x4x128xf32> to vector<4x128xf32>
    %c7 = arith.constant 7 : index
    %c0_23 = arith.constant 0 : index
    %c0_24 = arith.constant 0 : index
    %34 = vector.load %arg1[%c7, %c0_23, %c0_24] : memref<30x4x128xf32, #tpu.memory_space<vmem>>, vector<1x4x128xf32>
    %35 = vector.shape_cast %34 : vector<1x4x128xf32> to vector<4x128xf32>
    %c8 = arith.constant 8 : index
    %c0_25 = arith.constant 0 : index
    %c0_26 = arith.constant 0 : index
    %36 = vector.load %arg1[%c8, %c0_25, %c0_26] : memref<30x4x128xf32, #tpu.memory_space<vmem>>, vector<1x4x128xf32>
    %37 = vector.shape_cast %36 : vector<1x4x128xf32> to vector<4x128xf32>
    %c0_27 = arith.constant 0 : index
    %c0_28 = arith.constant 0 : index
    %c0_29 = arith.constant 0 : index
    %38 = vector.load %arg2[%c0_27, %c0_28, %c0_29] : memref<30x4x128xf32, #tpu.memory_space<vmem>>, vector<1x4x128xf32>
    %39 = vector.shape_cast %38 : vector<1x4x128xf32> to vector<4x128xf32>
    %c1_30 = arith.constant 1 : index
    %c0_31 = arith.constant 0 : index
    %c0_32 = arith.constant 0 : index
    %40 = vector.load %arg2[%c1_30, %c0_31, %c0_32] : memref<30x4x128xf32, #tpu.memory_space<vmem>>, vector<1x4x128xf32>
    %41 = vector.shape_cast %40 : vector<1x4x128xf32> to vector<4x128xf32>
    %c2_33 = arith.constant 2 : index
    %c0_34 = arith.constant 0 : index
    %c0_35 = arith.constant 0 : index
    %42 = vector.load %arg2[%c2_33, %c0_34, %c0_35] : memref<30x4x128xf32, #tpu.memory_space<vmem>>, vector<1x4x128xf32>
    %43 = vector.shape_cast %42 : vector<1x4x128xf32> to vector<4x128xf32>
    %c3_36 = arith.constant 3 : index
    %c0_37 = arith.constant 0 : index
    %c0_38 = arith.constant 0 : index
    %44 = vector.load %arg2[%c3_36, %c0_37, %c0_38] : memref<30x4x128xf32, #tpu.memory_space<vmem>>, vector<1x4x128xf32>
    %45 = vector.shape_cast %44 : vector<1x4x128xf32> to vector<4x128xf32>
    %c5_39 = arith.constant 5 : index
    %c0_40 = arith.constant 0 : index
    %c0_41 = arith.constant 0 : index
    %46 = vector.load %arg2[%c5_39, %c0_40, %c0_41] : memref<30x4x128xf32, #tpu.memory_space<vmem>>, vector<1x4x128xf32>
    %47 = vector.shape_cast %46 : vector<1x4x128xf32> to vector<4x128xf32>
    %c6_42 = arith.constant 6 : index
    %c0_43 = arith.constant 0 : index
    %c0_44 = arith.constant 0 : index
    %48 = vector.load %arg2[%c6_42, %c0_43, %c0_44] : memref<30x4x128xf32, #tpu.memory_space<vmem>>, vector<1x4x128xf32>
    %49 = vector.shape_cast %48 : vector<1x4x128xf32> to vector<4x128xf32>
    %c7_45 = arith.constant 7 : index
    %c0_46 = arith.constant 0 : index
    %c0_47 = arith.constant 0 : index
    %50 = vector.load %arg2[%c7_45, %c0_46, %c0_47] : memref<30x4x128xf32, #tpu.memory_space<vmem>>, vector<1x4x128xf32>
    %51 = vector.shape_cast %50 : vector<1x4x128xf32> to vector<4x128xf32>
    %c8_48 = arith.constant 8 : index
    %c0_49 = arith.constant 0 : index
    %c0_50 = arith.constant 0 : index
    %52 = vector.load %arg2[%c8_48, %c0_49, %c0_50] : memref<30x4x128xf32, #tpu.memory_space<vmem>>, vector<1x4x128xf32>
    %53 = vector.shape_cast %52 : vector<1x4x128xf32> to vector<4x128xf32>
    %cst_51 = arith.constant 0.0714285746 : f32
    %54 = vector.broadcast %cst_51 : f32 to vector<4x128xf32>
    %55 = arith.mulf %39, %54 : vector<4x128xf32>
    %cst_52 = arith.constant 0.0714285746 : f32
    %56 = vector.broadcast %cst_52 : f32 to vector<4x128xf32>
    %57 = arith.mulf %41, %56 : vector<4x128xf32>
    %cst_53 = arith.constant 5.000000e-01 : f32
    %58 = vector.broadcast %cst_53 : f32 to vector<4x128xf32>
    %59 = arith.mulf %58, %43 : vector<4x128xf32>
    %60 = arith.subf %55, %59 : vector<4x128xf32>
    %cst_54 = arith.constant 5.000000e-01 : f32
    %61 = vector.broadcast %cst_54 : f32 to vector<4x128xf32>
    %62 = arith.mulf %61, %45 : vector<4x128xf32>
    %63 = arith.subf %57, %62 : vector<4x128xf32>
    %cst_55 = arith.constant 5.000000e-01 : f32
    %64 = vector.broadcast %cst_55 : f32 to vector<4x128xf32>
    %65 = arith.mulf %64, %43 : vector<4x128xf32>
    %66 = arith.addf %55, %65 : vector<4x128xf32>
    %cst_56 = arith.constant 5.000000e-01 : f32
    %67 = vector.broadcast %cst_56 : f32 to vector<4x128xf32>
    %68 = arith.mulf %67, %45 : vector<4x128xf32>
    %69 = arith.addf %57, %68 : vector<4x128xf32>
    %70 = arith.subf %66, %60 : vector<4x128xf32>
    %71 = arith.subf %69, %63 : vector<4x128xf32>
    %72 = arith.mulf %70, %71 : vector<4x128xf32>
    %cst_57 = arith.constant 0.0714285746 : f32
    %73 = vector.broadcast %cst_57 : f32 to vector<4x128xf32>
    %74 = arith.mulf %23, %73 : vector<4x128xf32>
    %cst_58 = arith.constant 0.0714285746 : f32
    %75 = vector.broadcast %cst_58 : f32 to vector<4x128xf32>
    %76 = arith.mulf %25, %75 : vector<4x128xf32>
    %cst_59 = arith.constant 5.000000e-01 : f32
    %77 = vector.broadcast %cst_59 : f32 to vector<4x128xf32>
    %78 = arith.mulf %77, %27 : vector<4x128xf32>
    %79 = arith.subf %74, %78 : vector<4x128xf32>
    %cst_60 = arith.constant 5.000000e-01 : f32
    %80 = vector.broadcast %cst_60 : f32 to vector<4x128xf32>
    %81 = arith.mulf %80, %29 : vector<4x128xf32>
    %82 = arith.subf %76, %81 : vector<4x128xf32>
    %cst_61 = arith.constant 5.000000e-01 : f32
    %83 = vector.broadcast %cst_61 : f32 to vector<4x128xf32>
    %84 = arith.mulf %83, %27 : vector<4x128xf32>
    %85 = arith.addf %74, %84 : vector<4x128xf32>
    %cst_62 = arith.constant 5.000000e-01 : f32
    %86 = vector.broadcast %cst_62 : f32 to vector<4x128xf32>
    %87 = arith.mulf %86, %29 : vector<4x128xf32>
    %88 = arith.addf %76, %87 : vector<4x128xf32>
    %89 = arith.minimumf %85, %66 : vector<4x128xf32>
    %90 = arith.maximumf %79, %60 : vector<4x128xf32>
    %91 = arith.subf %89, %90 : vector<4x128xf32>
    %cst_63 = arith.constant 0.000000e+00 : f32
    %92 = vector.broadcast %cst_63 : f32 to vector<4x128xf32>
    %93 = arith.maximumf %91, %92 : vector<4x128xf32>
    %94 = arith.minimumf %88, %69 : vector<4x128xf32>
    %95 = arith.maximumf %82, %63 : vector<4x128xf32>
    %96 = arith.subf %94, %95 : vector<4x128xf32>
    %cst_64 = arith.constant 0.000000e+00 : f32
    %97 = vector.broadcast %cst_64 : f32 to vector<4x128xf32>
    %98 = arith.maximumf %96, %97 : vector<4x128xf32>
    %99 = arith.mulf %93, %98 : vector<4x128xf32>
    %100 = arith.subf %85, %79 : vector<4x128xf32>
    %101 = arith.subf %88, %82 : vector<4x128xf32>
    %102 = arith.mulf %100, %101 : vector<4x128xf32>
    %103 = arith.addf %102, %72 : vector<4x128xf32>
    %104 = arith.subf %103, %99 : vector<4x128xf32>
    %cst_65 = arith.constant 1.000000e+00 : f32
    %105 = vector.broadcast %cst_65 : f32 to vector<4x128xf32>
    %106 = arith.select %3, %104, %105 : vector<4x128xi1>, vector<4x128xf32>
    %107 = arith.divf %99, %106 : vector<4x128xf32>
    %cst_66 = arith.constant 0.0714285746 : f32
    %108 = vector.broadcast %cst_66 : f32 to vector<4x128xf32>
    %109 = arith.mulf %31, %108 : vector<4x128xf32>
    %cst_67 = arith.constant 0.0714285746 : f32
    %110 = vector.broadcast %cst_67 : f32 to vector<4x128xf32>
    %111 = arith.mulf %33, %110 : vector<4x128xf32>
    %cst_68 = arith.constant 5.000000e-01 : f32
    %112 = vector.broadcast %cst_68 : f32 to vector<4x128xf32>
    %113 = arith.mulf %112, %35 : vector<4x128xf32>
    %114 = arith.subf %109, %113 : vector<4x128xf32>
    %cst_69 = arith.constant 5.000000e-01 : f32
    %115 = vector.broadcast %cst_69 : f32 to vector<4x128xf32>
    %116 = arith.mulf %115, %37 : vector<4x128xf32>
    %117 = arith.subf %111, %116 : vector<4x128xf32>
    %cst_70 = arith.constant 5.000000e-01 : f32
    %118 = vector.broadcast %cst_70 : f32 to vector<4x128xf32>
    %119 = arith.mulf %118, %35 : vector<4x128xf32>
    %120 = arith.addf %109, %119 : vector<4x128xf32>
    %cst_71 = arith.constant 5.000000e-01 : f32
    %121 = vector.broadcast %cst_71 : f32 to vector<4x128xf32>
    %122 = arith.mulf %121, %37 : vector<4x128xf32>
    %123 = arith.addf %111, %122 : vector<4x128xf32>
    %124 = arith.minimumf %120, %66 : vector<4x128xf32>
    %125 = arith.maximumf %114, %60 : vector<4x128xf32>
    %126 = arith.subf %124, %125 : vector<4x128xf32>
    %cst_72 = arith.constant 0.000000e+00 : f32
    %127 = vector.broadcast %cst_72 : f32 to vector<4x128xf32>
    %128 = arith.maximumf %126, %127 : vector<4x128xf32>
    %129 = arith.minimumf %123, %69 : vector<4x128xf32>
    %130 = arith.maximumf %117, %63 : vector<4x128xf32>
    %131 = arith.subf %129, %130 : vector<4x128xf32>
    %cst_73 = arith.constant 0.000000e+00 : f32
    %132 = vector.broadcast %cst_73 : f32 to vector<4x128xf32>
    %133 = arith.maximumf %131, %132 : vector<4x128xf32>
    %134 = arith.mulf %128, %133 : vector<4x128xf32>
    %135 = arith.subf %120, %114 : vector<4x128xf32>
    %136 = arith.subf %123, %117 : vector<4x128xf32>
    %137 = arith.mulf %135, %136 : vector<4x128xf32>
    %138 = arith.addf %137, %72 : vector<4x128xf32>
    %139 = arith.subf %138, %134 : vector<4x128xf32>
    %cst_74 = arith.constant 1.000000e+00 : f32
    %140 = vector.broadcast %cst_74 : f32 to vector<4x128xf32>
    %141 = arith.select %3, %139, %140 : vector<4x128xi1>, vector<4x128xf32>
    %142 = arith.divf %134, %141 : vector<4x128xf32>
    %143 = arith.cmpf oge, %107, %142 : vector<4x128xf32>
    %144 = arith.maximumf %107, %142 : vector<4x128xf32>
    %145 = arith.select %143, %23, %31 : vector<4x128xi1>, vector<4x128xf32>
    %146 = arith.select %143, %25, %33 : vector<4x128xi1>, vector<4x128xf32>
    %147 = arith.select %143, %27, %35 : vector<4x128xi1>, vector<4x128xf32>
    %148 = arith.select %143, %29, %37 : vector<4x128xi1>, vector<4x128xf32>
    %149 = arith.select %143, %11, %13 : vector<4x128xi1>, vector<4x128xf32>
    %150 = arith.select %143, %39, %47 : vector<4x128xi1>, vector<4x128xf32>
    %151 = arith.select %143, %41, %49 : vector<4x128xi1>, vector<4x128xf32>
    %152 = arith.select %143, %43, %51 : vector<4x128xi1>, vector<4x128xf32>
    %153 = arith.select %143, %45, %53 : vector<4x128xi1>, vector<4x128xf32>
    %154 = arith.select %143, %13, %11 : vector<4x128xi1>, vector<4x128xf32>
    %155 = arith.subf %149, %144 : vector<4x128xf32>
    %156 = arith.mulf %155, %155 : vector<4x128xf32>
    %157 = arith.mulf %154, %154 : vector<4x128xf32>
    %158 = arith.subf %145, %150 : vector<4x128xf32>
    %159 = arith.mulf %158, %158 : vector<4x128xf32>
    %160 = arith.subf %146, %151 : vector<4x128xf32>
    %161 = arith.mulf %160, %160 : vector<4x128xf32>
    %162 = arith.addf %159, %161 : vector<4x128xf32>
    %cst_75 = arith.constant 1.000000e+00 : f32
    %163 = vector.broadcast %cst_75 : f32 to vector<4x128xf32>
    %164 = arith.select %3, %147, %163 : vector<4x128xi1>, vector<4x128xf32>
    %165 = math.sqrt %164 : vector<4x128xf32>
    %cst_76 = arith.constant 1.000000e+00 : f32
    %166 = vector.broadcast %cst_76 : f32 to vector<4x128xf32>
    %167 = arith.select %3, %152, %166 : vector<4x128xi1>, vector<4x128xf32>
    %168 = math.sqrt %167 : vector<4x128xf32>
    %169 = arith.subf %165, %168 : vector<4x128xf32>
    %170 = arith.mulf %169, %169 : vector<4x128xf32>
    %171 = arith.addf %162, %170 : vector<4x128xf32>
    %cst_77 = arith.constant 1.000000e+00 : f32
    %172 = vector.broadcast %cst_77 : f32 to vector<4x128xf32>
    %173 = arith.select %3, %148, %172 : vector<4x128xi1>, vector<4x128xf32>
    %174 = math.sqrt %173 : vector<4x128xf32>
    %cst_78 = arith.constant 1.000000e+00 : f32
    %175 = vector.broadcast %cst_78 : f32 to vector<4x128xf32>
    %176 = arith.select %3, %153, %175 : vector<4x128xi1>, vector<4x128xf32>
    %177 = math.sqrt %176 : vector<4x128xf32>
    %178 = arith.subf %174, %177 : vector<4x128xf32>
    %179 = arith.mulf %178, %178 : vector<4x128xf32>
    %180 = arith.addf %171, %179 : vector<4x128xf32>
    %cst_79 = arith.constant 0.000000e+00 : f32
    %181 = vector.broadcast %cst_79 : f32 to vector<4x128xf32>
    %c10 = arith.constant 10 : index
    %c0_80 = arith.constant 0 : index
    %c0_81 = arith.constant 0 : index
    %182 = vector.load %arg1[%c10, %c0_80, %c0_81] : memref<30x4x128xf32, #tpu.memory_space<vmem>>, vector<1x4x128xf32>
    %183 = vector.shape_cast %182 : vector<1x4x128xf32> to vector<4x128xf32>
    %c10_82 = arith.constant 10 : index
    %c0_83 = arith.constant 0 : index
    %c0_84 = arith.constant 0 : index
    %184 = vector.load %arg2[%c10_82, %c0_83, %c0_84] : memref<30x4x128xf32, #tpu.memory_space<vmem>>, vector<1x4x128xf32>
    %185 = vector.shape_cast %184 : vector<1x4x128xf32> to vector<4x128xf32>
    %186 = arith.subf %183, %185 : vector<4x128xf32>
    %187 = arith.mulf %186, %186 : vector<4x128xf32>
    %188 = arith.addf %181, %187 : vector<4x128xf32>
    %c11 = arith.constant 11 : index
    %c0_85 = arith.constant 0 : index
    %c0_86 = arith.constant 0 : index
    %189 = vector.load %arg1[%c11, %c0_85, %c0_86] : memref<30x4x128xf32, #tpu.memory_space<vmem>>, vector<1x4x128xf32>
    %190 = vector.shape_cast %189 : vector<1x4x128xf32> to vector<4x128xf32>
    %c11_87 = arith.constant 11 : index
    %c0_88 = arith.constant 0 : index
    %c0_89 = arith.constant 0 : index
    %191 = vector.load %arg2[%c11_87, %c0_88, %c0_89] : memref<30x4x128xf32, #tpu.memory_space<vmem>>, vector<1x4x128xf32>
    %192 = vector.shape_cast %191 : vector<1x4x128xf32> to vector<4x128xf32>
    %193 = arith.subf %190, %192 : vector<4x128xf32>
    %194 = arith.mulf %193, %193 : vector<4x128xf32>
    %195 = arith.addf %188, %194 : vector<4x128xf32>
    %c12 = arith.constant 12 : index
    %c0_90 = arith.constant 0 : index
    %c0_91 = arith.constant 0 : index
    %196 = vector.load %arg1[%c12, %c0_90, %c0_91] : memref<30x4x128xf32, #tpu.memory_space<vmem>>, vector<1x4x128xf32>
    %197 = vector.shape_cast %196 : vector<1x4x128xf32> to vector<4x128xf32>
    %c12_92 = arith.constant 12 : index
    %c0_93 = arith.constant 0 : index
    %c0_94 = arith.constant 0 : index
    %198 = vector.load %arg2[%c12_92, %c0_93, %c0_94] : memref<30x4x128xf32, #tpu.memory_space<vmem>>, vector<1x4x128xf32>
    %199 = vector.shape_cast %198 : vector<1x4x128xf32> to vector<4x128xf32>
    %200 = arith.subf %197, %199 : vector<4x128xf32>
    %201 = arith.mulf %200, %200 : vector<4x128xf32>
    %202 = arith.addf %195, %201 : vector<4x128xf32>
    %c13 = arith.constant 13 : index
    %c0_95 = arith.constant 0 : index
    %c0_96 = arith.constant 0 : index
    %203 = vector.load %arg1[%c13, %c0_95, %c0_96] : memref<30x4x128xf32, #tpu.memory_space<vmem>>, vector<1x4x128xf32>
    %204 = vector.shape_cast %203 : vector<1x4x128xf32> to vector<4x128xf32>
    %c13_97 = arith.constant 13 : index
    %c0_98 = arith.constant 0 : index
    %c0_99 = arith.constant 0 : index
    %205 = vector.load %arg2[%c13_97, %c0_98, %c0_99] : memref<30x4x128xf32, #tpu.memory_space<vmem>>, vector<1x4x128xf32>
    %206 = vector.shape_cast %205 : vector<1x4x128xf32> to vector<4x128xf32>
    %207 = arith.subf %204, %206 : vector<4x128xf32>
    %208 = arith.mulf %207, %207 : vector<4x128xf32>
    %209 = arith.addf %202, %208 : vector<4x128xf32>
    %c14 = arith.constant 14 : index
    %c0_100 = arith.constant 0 : index
    %c0_101 = arith.constant 0 : index
    %210 = vector.load %arg1[%c14, %c0_100, %c0_101] : memref<30x4x128xf32, #tpu.memory_space<vmem>>, vector<1x4x128xf32>
    %211 = vector.shape_cast %210 : vector<1x4x128xf32> to vector<4x128xf32>
    %c14_102 = arith.constant 14 : index
    %c0_103 = arith.constant 0 : index
    %c0_104 = arith.constant 0 : index
    %212 = vector.load %arg2[%c14_102, %c0_103, %c0_104] : memref<30x4x128xf32, #tpu.memory_space<vmem>>, vector<1x4x128xf32>
    %213 = vector.shape_cast %212 : vector<1x4x128xf32> to vector<4x128xf32>
    %214 = arith.subf %211, %213 : vector<4x128xf32>
    %215 = arith.mulf %214, %214 : vector<4x128xf32>
    %216 = arith.addf %209, %215 : vector<4x128xf32>
    %c15 = arith.constant 15 : index
    %c0_105 = arith.constant 0 : index
    %c0_106 = arith.constant 0 : index
    %217 = vector.load %arg1[%c15, %c0_105, %c0_106] : memref<30x4x128xf32, #tpu.memory_space<vmem>>, vector<1x4x128xf32>
    %218 = vector.shape_cast %217 : vector<1x4x128xf32> to vector<4x128xf32>
    %c15_107 = arith.constant 15 : index
    %c0_108 = arith.constant 0 : index
    %c0_109 = arith.constant 0 : index
    %219 = vector.load %arg2[%c15_107, %c0_108, %c0_109] : memref<30x4x128xf32, #tpu.memory_space<vmem>>, vector<1x4x128xf32>
    %220 = vector.shape_cast %219 : vector<1x4x128xf32> to vector<4x128xf32>
    %221 = arith.subf %218, %220 : vector<4x128xf32>
    %222 = arith.mulf %221, %221 : vector<4x128xf32>
    %223 = arith.addf %216, %222 : vector<4x128xf32>
    %c16 = arith.constant 16 : index
    %c0_110 = arith.constant 0 : index
    %c0_111 = arith.constant 0 : index
    %224 = vector.load %arg1[%c16, %c0_110, %c0_111] : memref<30x4x128xf32, #tpu.memory_space<vmem>>, vector<1x4x128xf32>
    %225 = vector.shape_cast %224 : vector<1x4x128xf32> to vector<4x128xf32>
    %c16_112 = arith.constant 16 : index
    %c0_113 = arith.constant 0 : index
    %c0_114 = arith.constant 0 : index
    %226 = vector.load %arg2[%c16_112, %c0_113, %c0_114] : memref<30x4x128xf32, #tpu.memory_space<vmem>>, vector<1x4x128xf32>
    %227 = vector.shape_cast %226 : vector<1x4x128xf32> to vector<4x128xf32>
    %228 = arith.subf %225, %227 : vector<4x128xf32>
    %229 = arith.mulf %228, %228 : vector<4x128xf32>
    %230 = arith.addf %223, %229 : vector<4x128xf32>
    %c17 = arith.constant 17 : index
    %c0_115 = arith.constant 0 : index
    %c0_116 = arith.constant 0 : index
    %231 = vector.load %arg1[%c17, %c0_115, %c0_116] : memref<30x4x128xf32, #tpu.memory_space<vmem>>, vector<1x4x128xf32>
    %232 = vector.shape_cast %231 : vector<1x4x128xf32> to vector<4x128xf32>
    %c17_117 = arith.constant 17 : index
    %c0_118 = arith.constant 0 : index
    %c0_119 = arith.constant 0 : index
    %233 = vector.load %arg2[%c17_117, %c0_118, %c0_119] : memref<30x4x128xf32, #tpu.memory_space<vmem>>, vector<1x4x128xf32>
    %234 = vector.shape_cast %233 : vector<1x4x128xf32> to vector<4x128xf32>
    %235 = arith.subf %232, %234 : vector<4x128xf32>
    %236 = arith.mulf %235, %235 : vector<4x128xf32>
    %237 = arith.addf %230, %236 : vector<4x128xf32>
    %c18 = arith.constant 18 : index
    %c0_120 = arith.constant 0 : index
    %c0_121 = arith.constant 0 : index
    %238 = vector.load %arg1[%c18, %c0_120, %c0_121] : memref<30x4x128xf32, #tpu.memory_space<vmem>>, vector<1x4x128xf32>
    %239 = vector.shape_cast %238 : vector<1x4x128xf32> to vector<4x128xf32>
    %c18_122 = arith.constant 18 : index
    %c0_123 = arith.constant 0 : index
    %c0_124 = arith.constant 0 : index
    %240 = vector.load %arg2[%c18_122, %c0_123, %c0_124] : memref<30x4x128xf32, #tpu.memory_space<vmem>>, vector<1x4x128xf32>
    %241 = vector.shape_cast %240 : vector<1x4x128xf32> to vector<4x128xf32>
    %242 = arith.subf %239, %241 : vector<4x128xf32>
    %243 = arith.mulf %242, %242 : vector<4x128xf32>
    %244 = arith.addf %237, %243 : vector<4x128xf32>
    %c19 = arith.constant 19 : index
    %c0_125 = arith.constant 0 : index
    %c0_126 = arith.constant 0 : index
    %245 = vector.load %arg1[%c19, %c0_125, %c0_126] : memref<30x4x128xf32, #tpu.memory_space<vmem>>, vector<1x4x128xf32>
    %246 = vector.shape_cast %245 : vector<1x4x128xf32> to vector<4x128xf32>
    %c19_127 = arith.constant 19 : index
    %c0_128 = arith.constant 0 : index
    %c0_129 = arith.constant 0 : index
    %247 = vector.load %arg2[%c19_127, %c0_128, %c0_129] : memref<30x4x128xf32, #tpu.memory_space<vmem>>, vector<1x4x128xf32>
    %248 = vector.shape_cast %247 : vector<1x4x128xf32> to vector<4x128xf32>
    %249 = arith.subf %246, %248 : vector<4x128xf32>
    %250 = arith.mulf %249, %249 : vector<4x128xf32>
    %251 = arith.addf %244, %250 : vector<4x128xf32>
    %c20 = arith.constant 20 : index
    %c0_130 = arith.constant 0 : index
    %c0_131 = arith.constant 0 : index
    %252 = vector.load %arg1[%c20, %c0_130, %c0_131] : memref<30x4x128xf32, #tpu.memory_space<vmem>>, vector<1x4x128xf32>
    %253 = vector.shape_cast %252 : vector<1x4x128xf32> to vector<4x128xf32>
    %c20_132 = arith.constant 20 : index
    %c0_133 = arith.constant 0 : index
    %c0_134 = arith.constant 0 : index
    %254 = vector.load %arg2[%c20_132, %c0_133, %c0_134] : memref<30x4x128xf32, #tpu.memory_space<vmem>>, vector<1x4x128xf32>
    %255 = vector.shape_cast %254 : vector<1x4x128xf32> to vector<4x128xf32>
    %256 = arith.subf %253, %255 : vector<4x128xf32>
    %257 = arith.mulf %256, %256 : vector<4x128xf32>
    %258 = arith.addf %251, %257 : vector<4x128xf32>
    %c21 = arith.constant 21 : index
    %c0_135 = arith.constant 0 : index
    %c0_136 = arith.constant 0 : index
    %259 = vector.load %arg1[%c21, %c0_135, %c0_136] : memref<30x4x128xf32, #tpu.memory_space<vmem>>, vector<1x4x128xf32>
    %260 = vector.shape_cast %259 : vector<1x4x128xf32> to vector<4x128xf32>
    %c21_137 = arith.constant 21 : index
    %c0_138 = arith.constant 0 : index
    %c0_139 = arith.constant 0 : index
    %261 = vector.load %arg2[%c21_137, %c0_138, %c0_139] : memref<30x4x128xf32, #tpu.memory_space<vmem>>, vector<1x4x128xf32>
    %262 = vector.shape_cast %261 : vector<1x4x128xf32> to vector<4x128xf32>
    %263 = arith.subf %260, %262 : vector<4x128xf32>
    %264 = arith.mulf %263, %263 : vector<4x128xf32>
    %265 = arith.addf %258, %264 : vector<4x128xf32>
    %c22 = arith.constant 22 : index
    %c0_140 = arith.constant 0 : index
    %c0_141 = arith.constant 0 : index
    %266 = vector.load %arg1[%c22, %c0_140, %c0_141] : memref<30x4x128xf32, #tpu.memory_space<vmem>>, vector<1x4x128xf32>
    %267 = vector.shape_cast %266 : vector<1x4x128xf32> to vector<4x128xf32>
    %c22_142 = arith.constant 22 : index
    %c0_143 = arith.constant 0 : index
    %c0_144 = arith.constant 0 : index
    %268 = vector.load %arg2[%c22_142, %c0_143, %c0_144] : memref<30x4x128xf32, #tpu.memory_space<vmem>>, vector<1x4x128xf32>
    %269 = vector.shape_cast %268 : vector<1x4x128xf32> to vector<4x128xf32>
    %270 = arith.subf %267, %269 : vector<4x128xf32>
    %271 = arith.mulf %270, %270 : vector<4x128xf32>
    %272 = arith.addf %265, %271 : vector<4x128xf32>
    %c23 = arith.constant 23 : index
    %c0_145 = arith.constant 0 : index
    %c0_146 = arith.constant 0 : index
    %273 = vector.load %arg1[%c23, %c0_145, %c0_146] : memref<30x4x128xf32, #tpu.memory_space<vmem>>, vector<1x4x128xf32>
    %274 = vector.shape_cast %273 : vector<1x4x128xf32> to vector<4x128xf32>
    %c23_147 = arith.constant 23 : index
    %c0_148 = arith.constant 0 : index
    %c0_149 = arith.constant 0 : index
    %275 = vector.load %arg2[%c23_147, %c0_148, %c0_149] : memref<30x4x128xf32, #tpu.memory_space<vmem>>, vector<1x4x128xf32>
    %276 = vector.shape_cast %275 : vector<1x4x128xf32> to vector<4x128xf32>
    %277 = arith.subf %274, %276 : vector<4x128xf32>
    %278 = arith.mulf %277, %277 : vector<4x128xf32>
    %279 = arith.addf %272, %278 : vector<4x128xf32>
    %c24 = arith.constant 24 : index
    %c0_150 = arith.constant 0 : index
    %c0_151 = arith.constant 0 : index
    %280 = vector.load %arg1[%c24, %c0_150, %c0_151] : memref<30x4x128xf32, #tpu.memory_space<vmem>>, vector<1x4x128xf32>
    %281 = vector.shape_cast %280 : vector<1x4x128xf32> to vector<4x128xf32>
    %c24_152 = arith.constant 24 : index
    %c0_153 = arith.constant 0 : index
    %c0_154 = arith.constant 0 : index
    %282 = vector.load %arg2[%c24_152, %c0_153, %c0_154] : memref<30x4x128xf32, #tpu.memory_space<vmem>>, vector<1x4x128xf32>
    %283 = vector.shape_cast %282 : vector<1x4x128xf32> to vector<4x128xf32>
    %284 = arith.subf %281, %283 : vector<4x128xf32>
    %285 = arith.mulf %284, %284 : vector<4x128xf32>
    %286 = arith.addf %279, %285 : vector<4x128xf32>
    %c25 = arith.constant 25 : index
    %c0_155 = arith.constant 0 : index
    %c0_156 = arith.constant 0 : index
    %287 = vector.load %arg1[%c25, %c0_155, %c0_156] : memref<30x4x128xf32, #tpu.memory_space<vmem>>, vector<1x4x128xf32>
    %288 = vector.shape_cast %287 : vector<1x4x128xf32> to vector<4x128xf32>
    %c25_157 = arith.constant 25 : index
    %c0_158 = arith.constant 0 : index
    %c0_159 = arith.constant 0 : index
    %289 = vector.load %arg2[%c25_157, %c0_158, %c0_159] : memref<30x4x128xf32, #tpu.memory_space<vmem>>, vector<1x4x128xf32>
    %290 = vector.shape_cast %289 : vector<1x4x128xf32> to vector<4x128xf32>
    %291 = arith.subf %288, %290 : vector<4x128xf32>
    %292 = arith.mulf %291, %291 : vector<4x128xf32>
    %293 = arith.addf %286, %292 : vector<4x128xf32>
    %c26 = arith.constant 26 : index
    %c0_160 = arith.constant 0 : index
    %c0_161 = arith.constant 0 : index
    %294 = vector.load %arg1[%c26, %c0_160, %c0_161] : memref<30x4x128xf32, #tpu.memory_space<vmem>>, vector<1x4x128xf32>
    %295 = vector.shape_cast %294 : vector<1x4x128xf32> to vector<4x128xf32>
    %c26_162 = arith.constant 26 : index
    %c0_163 = arith.constant 0 : index
    %c0_164 = arith.constant 0 : index
    %296 = vector.load %arg2[%c26_162, %c0_163, %c0_164] : memref<30x4x128xf32, #tpu.memory_space<vmem>>, vector<1x4x128xf32>
    %297 = vector.shape_cast %296 : vector<1x4x128xf32> to vector<4x128xf32>
    %298 = arith.subf %295, %297 : vector<4x128xf32>
    %299 = arith.mulf %298, %298 : vector<4x128xf32>
    %300 = arith.addf %293, %299 : vector<4x128xf32>
    %c27 = arith.constant 27 : index
    %c0_165 = arith.constant 0 : index
    %c0_166 = arith.constant 0 : index
    %301 = vector.load %arg1[%c27, %c0_165, %c0_166] : memref<30x4x128xf32, #tpu.memory_space<vmem>>, vector<1x4x128xf32>
    %302 = vector.shape_cast %301 : vector<1x4x128xf32> to vector<4x128xf32>
    %c27_167 = arith.constant 27 : index
    %c0_168 = arith.constant 0 : index
    %c0_169 = arith.constant 0 : index
    %303 = vector.load %arg2[%c27_167, %c0_168, %c0_169] : memref<30x4x128xf32, #tpu.memory_space<vmem>>, vector<1x4x128xf32>
    %304 = vector.shape_cast %303 : vector<1x4x128xf32> to vector<4x128xf32>
    %305 = arith.subf %302, %304 : vector<4x128xf32>
    %306 = arith.mulf %305, %305 : vector<4x128xf32>
    %307 = arith.addf %300, %306 : vector<4x128xf32>
    %c28 = arith.constant 28 : index
    %c0_170 = arith.constant 0 : index
    %c0_171 = arith.constant 0 : index
    %308 = vector.load %arg1[%c28, %c0_170, %c0_171] : memref<30x4x128xf32, #tpu.memory_space<vmem>>, vector<1x4x128xf32>
    %309 = vector.shape_cast %308 : vector<1x4x128xf32> to vector<4x128xf32>
    %c28_172 = arith.constant 28 : index
    %c0_173 = arith.constant 0 : index
    %c0_174 = arith.constant 0 : index
    %310 = vector.load %arg2[%c28_172, %c0_173, %c0_174] : memref<30x4x128xf32, #tpu.memory_space<vmem>>, vector<1x4x128xf32>
    %311 = vector.shape_cast %310 : vector<1x4x128xf32> to vector<4x128xf32>
    %312 = arith.subf %309, %311 : vector<4x128xf32>
    %313 = arith.mulf %312, %312 : vector<4x128xf32>
    %314 = arith.addf %307, %313 : vector<4x128xf32>
    %c29 = arith.constant 29 : index
    %c0_175 = arith.constant 0 : index
    %c0_176 = arith.constant 0 : index
    %315 = vector.load %arg1[%c29, %c0_175, %c0_176] : memref<30x4x128xf32, #tpu.memory_space<vmem>>, vector<1x4x128xf32>
    %316 = vector.shape_cast %315 : vector<1x4x128xf32> to vector<4x128xf32>
    %c29_177 = arith.constant 29 : index
    %c0_178 = arith.constant 0 : index
    %c0_179 = arith.constant 0 : index
    %317 = vector.load %arg2[%c29_177, %c0_178, %c0_179] : memref<30x4x128xf32, #tpu.memory_space<vmem>>, vector<1x4x128xf32>
    %318 = vector.shape_cast %317 : vector<1x4x128xf32> to vector<4x128xf32>
    %319 = arith.subf %316, %318 : vector<4x128xf32>
    %320 = arith.mulf %319, %319 : vector<4x128xf32>
    %321 = arith.addf %314, %320 : vector<4x128xf32>
    %cst_180 = arith.constant 5.000000e+00 : f32
    %322 = vector.broadcast %cst_180 : f32 to vector<4x128xf32>
    %323 = arith.mulf %322, %180 : vector<4x128xf32>
    %cst_181 = arith.constant 2.000000e+00 : f32
    %324 = vector.broadcast %cst_181 : f32 to vector<4x128xf32>
    %325 = arith.mulf %324, %156 : vector<4x128xf32>
    %326 = arith.addf %323, %325 : vector<4x128xf32>
    %327 = arith.addf %326, %157 : vector<4x128xf32>
    %328 = arith.addf %327, %321 : vector<4x128xf32>
    %329 = arith.mulf %7, %328 : vector<4x128xf32>
    %cst_182 = arith.constant 5.000000e-01 : f32
    %330 = vector.broadcast %cst_182 : f32 to vector<4x128xf32>
    %331 = arith.mulf %330, %21 : vector<4x128xf32>
    %332 = arith.addf %329, %331 : vector<4x128xf32>
    %cst_183 = arith.constant dense<0.000000e+00> : vector<128xf32>
    %333 = vector.multi_reduction <add>, %332, %cst_183 [0] : vector<4x128xf32> to vector<128xf32>
    %334 = vector.shape_cast %333 : vector<128xf32> to vector<1x128xf32>
    %335 = vector.shape_cast %334 : vector<1x128xf32> to vector<1x1x128xf32>
    %c0_184 = arith.constant 0 : index
    %c0_185 = arith.constant 0 : index
    %c0_186 = arith.constant 0 : index
    %336 = vector.load %arg3[%c0_184, %c0_185, %c0_186] : memref<1x1x128xf32, #tpu.memory_space<vmem>>, vector<1x1x128xf32>
    tpu.vector_store %arg3[%c0_184, %c0_185, %c0_186], %335 {strides = array<i32>} : memref<1x1x128xf32, #tpu.memory_space<vmem>>, vector<1x1x128xf32>,
    return
  }
  func.func @transform_0(%arg0: i32) -> (i32, i32, i32) {
    %c0_i32 = arith.constant 0 : i32
    %c0_i32_0 = arith.constant 0 : i32
    %c0_i32_1 = arith.constant 0 : i32
    return %c0_i32, %arg0, %c0_i32_0 : i32, i32, i32
  }
  func.func @transform_1(%arg0: i32) -> (i32, i32, i32) {
    %c0_i32 = arith.constant 0 : i32
    %c0_i32_0 = arith.constant 0 : i32
    %c0_i32_1 = arith.constant 0 : i32
    return %c0_i32, %arg0, %c0_i32_0 : i32, i32, i32
  }
  func.func @transform_2(%arg0: i32) -> (i32, i32, i32) {
    %c0_i32 = arith.constant 0 : i32
    %c0_i32_0 = arith.constant 0 : i32
    %c0_i32_1 = arith.constant 0 : i32
    return %arg0, %c0_i32, %c0_i32_0 : i32, i32, i32
  }
}

</mosaic_0001>

<bundles_post_ra>
// kernel: _yolo_loss_impl.1
= control target key start
LH: loop header
LB: loop body
LE: loop exit
PB: predicated region body
PF: predicated region fallthrough
CT: control target
= control target key end

     0   :  { %vm328_vm11 = vcmask 1043456   ;;  %s754_s0 = inlined_call_operand.vmem [shape: f32[30,4,128], index: 0, kind: input, shape index: {}]   ;;  %s755_s1 = inlined_call_operand.vmem [shape: f32[30,4,128], index: 1, kind: input, shape index: {}]   ;;  %s756_s2 = inlined_call_operand.vmem [shape: f32[1,1,128], index: 2, kind: output, shape index: {}]  }
   0x1   :  { %v433_v0 = vld [vmem:[%s754_s0] sm:$0xf]  ;;  %v438_v1 = vld [vmem:[%s754_s0 + $0x4] sm:$0xf]  ;;  %v453_v4 = vld [vmem:[%s755_s1 + $0x8] sm:$0xf] }
   0x2   :  { %v443_v2 = vld [vmem:[%s755_s1] sm:$0xf]  ;;  %v448_v3 = vld [vmem:[%s755_s1 + $0x4] sm:$0xf]  ;;  %v458_v5 = vld [vmem:[%s755_s1 + $0xc] sm:$0xf] }
   0x3   :  { %v463_v6 = vld [vmem:[%s754_s0 + $0x8] sm:$0xf]  ;;  %v468_v7 = vld [vmem:[%s754_s0 + $0xc] sm:$0xf]  ;;  %v473_v8 = vld [vmem:[%s754_s0 + $0x14] sm:$0xf] }
   0x4   :  { %v478_v9 = vld [vmem:[%s755_s1 + $0x10] sm:$0xf]  ;;  %v483_v10 = vld [vmem:[%s754_s0 + $0x18] sm:$0xf]  ;;  %v61_v11 = vmul.f32 0.071428575, %v443_v2 }
   0x5   :  { %v62_v12 = vmul.f32 0.071428575, %v448_v3  ;;  %v490_v13 = vld [vmem:[%s754_s0 + $0x1c] sm:$0xf]  ;;  %v63_v14 = vmul.f32 0.5, %v453_v4  ;;  %v65_v15 = vmul.f32 0.5, %v458_v5 }
   0x6   :  { %v72_v16 = vmul.f32 0.071428575, %v433_v0  ;;  %v73_v17 = vmul.f32 0.071428575, %v438_v1  ;;  %v74_v18 = vmul.f32 0.5, %v463_v6  ;;  %v76_v19 = vmul.f32 0.5, %v468_v7 }
   0x7   :  { %v97_v20 = vmul.f32 0.071428575, %v473_v8  ;;  %v64_v21 = vsub.f32 %v61_v11, %v63_v14  ;;  %v66_v22 = vsub.f32 %v62_v12, %v65_v15  ;;  %v67_v23 = vadd.f32 %v63_v14, %v61_v11  ;;  %v502_v25 = vld [vmem:[%s754_s0 + $0x20] sm:$0xf]  ;;  %v361_v34 = vld [vmem:[%s754_s0 + $0x28] sm:$0xf] }
   0x8   :  { %v68_v24 = vadd.f32 %v65_v15, %v62_v12  ;;  %v75_v26 = vsub.f32 %v72_v16, %v74_v18  ;;  %v77_v27 = vsub.f32 %v73_v17, %v76_v19  ;;  %v78_v28 = vadd.f32 %v74_v18, %v72_v16  ;;  %v362_v39 = vld [vmem:[%s755_s1 + $0x28] sm:$0xf]  ;;  %v363_v40 = vld [vmem:[%s754_s0 + $0x2c] sm:$0xf]  ;;  %v365_v54 = vld [vmem:[%s754_s0 + $0x30] sm:$0xf] }
   0x9   :  { %v79_v29 = vadd.f32 %v76_v19, %v73_v17  ;;  %vm13_vm0 = vcmp.gt.f32.partialorder %v478_v9, 0.0  ;;  %v69_v30 = vsub.f32 %v67_v23, %v64_v21  ;;  %v98_v32 = vmul.f32 0.071428575, %v483_v10  ;;  %v364_v41 = vld [vmem:[%s755_s1 + $0x2c] sm:$0xf] }
   0xa   :  { %v70_v31 = vsub.f32 %v68_v24, %v66_v22  ;;  %v99_v33 = vmul.f32 0.5, %v490_v13  ;;  %v80_v35 = vmin.f32 %v78_v28, %v67_v23  ;;  %v81_v36 = vmax.f32 %v75_v26, %v64_v21  ;;  %v366_v55 = vld [vmem:[%s755_s1 + $0x30] sm:$0xf]  ;;  %v367_v60 = vld [vmem:[%s754_s0 + $0x34] sm:$0xf] }
   0xb   :  { %v84_v37 = vmin.f32 %v79_v29, %v68_v24  ;;  %v85_v38 = vmax.f32 %v77_v27, %v66_v22  ;;  %v89_v43 = vsub.f32 %v78_v28, %v75_v26  ;;  %v90_v44 = vsub.f32 %v79_v29, %v77_v27  ;;  %v368_v61 = vld [vmem:[%s755_s1 + $0x34] sm:$0xf]  ;;  %v369_v14 = vld [vmem:[%s754_s0 + $0x38] sm:$0xf] }
   0xc   :  { %v71_v42 = vmul.f32 %v70_v31, %v69_v30  ;;  %v100_v45 = vsub.f32 %v97_v20, %v99_v33  ;;  %v82_v46 = vsub.f32 %v80_v35, %v81_v36  ;;  %v101_v48 = vmul.f32 0.5, %v502_v25  ;;  %v370_v15 = vld [vmem:[%s755_s1 + $0x38] sm:$0xf] }
   0xd   :  { %v86_v47 = vsub.f32 %v84_v37, %v85_v38  ;;  %v103_v49 = vadd.f32 %v99_v33, %v97_v20  ;;  %v91_v50 = vmul.f32 %v90_v44, %v89_v43  ;;  %v184_v52 = vsub.f32 %v361_v34, %v362_v39 }
   0xe   :  { %v106_v51 = vmax.f32 %v100_v45, %v64_v21  ;;  %v191_v53 = vsub.f32 %v363_v40, %v364_v41  ;;  %v83_v56 = vmax.f32 %v82_v46, 0.0  ;;  %v102_v58 = vsub.f32 %v98_v32, %v101_v48  ;;  %v375_v40 = vld [vmem:[%s754_s0 + $0x44] sm:$0xf] }
   0xf   :  { %v87_v57 = vmax.f32 %v86_v47, 0.0  ;;  %v104_v59 = vadd.f32 %v101_v48, %v98_v32  ;;  %v92_v62 = vadd.f32 %v91_v50, %v71_v42  ;;  %v105_v63 = vmin.f32 %v103_v49, %v67_v23  ;;  %v371_v23 = vld [vmem:[%s754_s0 + $0x3c] sm:$0xf]  ;;  %v376_v41 = vld [vmem:[%s755_s1 + $0x44] sm:$0xf] }
  0x10   :  { %v114_v11 = vsub.f32 %v103_v49, %v100_v45  ;;  %v185_v12 = vmul.f32 %v184_v52, %v184_v52  ;;  %v110_v18 = vmax.f32 %v102_v58, %v66_v22  ;;  %v192_v21 = vmul.f32 %v191_v53, %v191_v53  ;;  %v372_v32 = vld [vmem:[%s755_s1 + $0x3c] sm:$0xf]  ;;  %v373_v22 = vld [vmem:[%s754_s0 + $0x40] sm:$0xf]  ;;  %v378_v52 = vld [vmem:[%s755_s1 + $0x48] sm:$0xf] }
  0x11   :  { %v88_v16 = vmul.f32 %v87_v57, %v83_v56  ;;  %v109_v17 = vmin.f32 %v104_v59, %v68_v24  ;;  %v115_v19 = vsub.f32 %v104_v59, %v102_v58  ;;  %v107_v20 = vsub.f32 %v105_v63, %v106_v51  ;;  %v374_v24 = vld [vmem:[%s755_s1 + $0x40] sm:$0xf]  ;;  %v379_v59 = vld [vmem:[%s754_s0 + $0x4c] sm:$0xf] }
  0x12   :  { %v198_v26 = vsub.f32 %v365_v54, %v366_v55  ;;  %v205_v27 = vsub.f32 %v367_v60, %v368_v61  ;;  %v212_v31 = vsub.f32 %v369_v14, %v370_v15  ;;  %v193_v34 = vadd.f32 %v192_v21, %v185_v12  ;;  %v380_v60 = vld [vmem:[%s755_s1 + $0x4c] sm:$0xf]  ;;  %v381_v12 = vld [vmem:[%s754_s0 + $0x50] sm:$0xf]  ;;  %v384_v21 = vld [vmem:[%s755_s1 + $0x54] sm:$0xf] }
  0x13   :  { %v93_v28 = vsub.f32 %v92_v62, %v88_v16  ;;  %v111_v29 = vsub.f32 %v109_v17, %v110_v18  ;;  %v116_v30 = vmul.f32 %v115_v19, %v114_v11  ;;  %v108_v33 = vmax.f32 %v107_v20, 0.0  ;;  %v382_v14 = vld [vmem:[%s755_s1 + $0x50] sm:$0xf]  ;;  %v383_v20 = vld [vmem:[%s754_s0 + $0x54] sm:$0xf] }
  0x14   :  { %v199_v35 = vmul.f32 %v198_v26, %v198_v26  ;;  %v206_v36 = vmul.f32 %v205_v27, %v205_v27  ;;  %v213_v44 = vmul.f32 %v212_v31, %v212_v31  ;;  %v219_v45 = vsub.f32 %v371_v23, %v372_v32 }
  0x15   :  { %v94_v37 = vsel %vm13_vm0, %v93_v28, 1.0  ;;  %v112_v38 = vmax.f32 %v111_v29, 0.0  ;;  %v117_v39 = vadd.f32 %v116_v30, %v71_v42  ;;  %v226_v46 = vsub.f32 %v373_v22, %v374_v24  ;;  %v377_v42 = vld [vmem:[%s754_s0 + $0x48] sm:$0xf]  ;;  %v385_v29 = vld [vmem:[%s754_s0 + $0x58] sm:$0xf] }
  0x16   :  { %v200_v43 = vadd.f32 %v199_v35, %v193_v34  ;;  %402 = vrcp.f32 %v94_v37  ;;  %v220_v49 = vmul.f32 %v219_v45, %v219_v45  ;;  %v233_v50 = vsub.f32 %v375_v40, %v376_v41  ;;  %v386_v30 = vld [vmem:[%s755_s1 + $0x58] sm:$0xf]  ;;  %v359_v22 = vld [vmem:[%s755_s1 + $0x1c] sm:$0xf]  ;;  %v390_v45 = vld [vmem:[%s755_s1 + $0x60] sm:$0xf] }
  0x17   :  { %v113_v47 = vmul.f32 %v112_v38, %v108_v33  ;;  %v227_v54 = vmul.f32 %v226_v46, %v226_v46  ;;  %v240_v58 = vsub.f32 %v377_v42, %v378_v52  ;;  %v247_v11 = vsub.f32 %v379_v59, %v380_v60  ;;  %v387_v35 = vld [vmem:[%s754_s0 + $0x5c] sm:$0xf]  ;;  %v358_v46 = vld [vmem:[%s755_s1 + $0x18] sm:$0xf]  ;;  %v391_v42 = vld [vmem:[%s754_s0 + $0x64] sm:$0xf] }
  0x18   :  { %v207_v48 = vadd.f32 %v206_v36, %v200_v43  ;;  %v234_v57 = vmul.f32 %v233_v50, %v233_v50  ;;  %v254_v18 = vsub.f32 %v381_v12, %v382_v14  ;;  %v261_v28 = vsub.f32 %v383_v20, %v384_v21  ;;  %v388_v36 = vld [vmem:[%s755_s1 + $0x5c] sm:$0xf]  ;;  %v392_v52 = vld [vmem:[%s755_s1 + $0x64] sm:$0xf]  ;;  %v398_v12 = vld [vmem:[%s755_s1 + $0x70] sm:$0xf] }
  0x19   :  { %v118_v51 = vsub.f32 %v117_v39, %v113_v47  ;;  %v241_v63 = vmul.f32 %v240_v58, %v240_v58  ;;  %v248_v17 = vmul.f32 %v247_v11, %v247_v11  ;;  %v360_v39 = vld [vmem:[%s755_s1 + $0x20] sm:$0xf]  ;;  %v275_v41 = vsub.f32 %v387_v35, %v388_v36  ;;  %v346_v58 = vld [vmem:[%s755_s1 + $0x24] sm:$0xf]  ;;  %v397_v11 = vld [vmem:[%s754_s0 + $0x70] sm:$0xf] }
  0x1a   :  { %v214_v53 = vadd.f32 %v213_v44, %v207_v48  ;;  %v255_v23 = vmul.f32 %v254_v18, %v254_v18  ;;  %v262_v34 = vmul.f32 %v261_v28, %v261_v28  ;;  %vm14_vm10 = vcmp.eq.f32.partialorder %v478_v9, 0.0 }
  0x1b   :  { %v119_v55 = vsel %vm13_vm0, %v118_v51, 1.0 }
  0x1c   :  { %404 = vrcp.f32 %v119_v55  ;;  %v221_v56 = vadd.f32 %v220_v49, %v214_v53  ;;  %v276_v49 = vmul.f32 %v275_v41, %v275_v41  ;;  %v394_v55 = vld [vmem:[%s755_s1 + $0x68] sm:$0xf] }
  0x1e   :  { %v228_v61 = vadd.f32 %v227_v54, %v221_v56  ;;  %v393_v54 = vld [vmem:[%s754_s0 + $0x68] sm:$0xf]  ;;  %v289_v56 = vsub.f32 %v391_v42, %v392_v52 }
  0x20   :  { %v235_v62 = vadd.f32 %v234_v57, %v228_v61  ;;  %v693_v57 = vld [vmem:[%s754_s0 + $0x10] sm:$0xf]  ;;  %v701_v61 = vld [vmem:[%s754_s0 + $0x24] sm:$0xf] }
  0x21   :  { %v25_v14 = vsub.f32 %v693_v57, %v478_v9 }
  0x22   :  { %v242_v15 = vadd.f32 %v241_v63, %v235_v62  ;;  %v296_v62 = vsub.f32 %v393_v54, %v394_v55 }
  0x23   :  { %v403_v19 = vpop.eup %402 }
  0x24   :  { %v584_v26 = vmul.f32 %v403_v19, %v88_v16  ;;  %v249_v27 = vadd.f32 %v248_v17, %v242_v15  ;;  %v268_v16 = vsub.f32 %v385_v29, %v386_v30  ;;  %v27_v15 = vsub.f32 %v701_v61, %v346_v58 }
  0x25   :  { %v290_v19 = vmul.f32 %v289_v56, %v289_v56  ;;  %v297_v30 = vmul.f32 %v296_v62, %v296_v62 }
  0x26   :  { %v256_v33 = vadd.f32 %v255_v23, %v249_v27  ;;  %v269_v40 = vmul.f32 %v268_v16, %v268_v16  ;;  %v310_v23 = vsub.f32 %v397_v11, %v398_v12  ;;  %v28_v42 = vmul.f32 %v27_v15, %v27_v15 }
  0x29   :  { %v405_v31 = vpop.eup %404 }
  0x2a   :  { %v592_v32 = vmul.f32 %v405_v31, %v113_v47 }
  0x2c   :  { %vm599_vm1 = vcmp.ge.f32.partialorder %v584_v26, %v592_v32  ;;  %v123_v17 = vmax.f32 %v584_v26, %v592_v32 }
  0x2d   :  { %v126_v37 = vsel %vm599_vm1, %v463_v6, %v490_v13  ;;  %v131_v38 = vsel %vm599_vm1, %v453_v4, %v359_v22  ;;  %v127_v43 = vsel %vm599_vm1, %v468_v7, %v502_v25  ;;  %v263_v4 = vadd.f32 %v262_v34, %v256_v33  ;;  %v389_v13 = vld [vmem:[%s754_s0 + $0x60] sm:$0xf]  ;;  %v357_v25 = vld [vmem:[%s755_s1 + $0x14] sm:$0xf] }
  0x2e   :  { %v625_v44 = vsel %vm13_vm0, %v126_v37, 1.0  ;;  %v629_v6 = vsel %vm13_vm0, %v131_v38, 1.0  ;;  %v132_v7 = vsel %vm599_vm1, %v458_v5, %v360_v39  ;;  %v650_v47 = vsel %vm13_vm0, %v127_v43, 1.0 }
  0x2f   :  { %406 = vrsqrt.f32 %v625_v44  ;;  %v270_v48 = vadd.f32 %v269_v40, %v263_v4  ;;  %v282_v50 = vsub.f32 %v389_v13, %v390_v45  ;;  %v124_v5 = vsel %vm599_vm1, %v433_v0, %v473_v8 }
  0x30   :  { %408 = vrsqrt.f32 %v629_v6  ;;  %v659_v51 = vsel %vm13_vm0, %v132_v7, 1.0  ;;  %v125_v53 = vsel %vm599_vm1, %v438_v1, %v483_v10  ;;  %v129_v0 = vsel %vm599_vm1, %v443_v2, %v357_v25  ;;  %v395_v1 = vld [vmem:[%s754_s0 + $0x6c] sm:$0xf] }
  0x31   :  { %410 = vrsqrt.f32 %v650_v47  ;;  %v130_v8 = vsel %vm599_vm1, %v448_v3, %v358_v46  ;;  %v396_v2 = vld [vmem:[%s755_s1 + $0x6c] sm:$0xf]  ;;  %v277_v10 = vadd.f32 %v276_v49, %v270_v48  ;;  %v283_v3 = vmul.f32 %v282_v50, %v282_v50  ;;  %v400_v46 = vld [vmem:[%s755_s1 + $0x74] sm:$0xf] }
  0x32   :  { %412 = vrsqrt.f32 %v659_v51  ;;  %v137_v59 = vsub.f32 %v124_v5, %v129_v0  ;;  %v139_v60 = vsub.f32 %v125_v53, %v130_v8  ;;  %v303_v63 = vsub.f32 %v395_v1, %v396_v2 }
  0x33   :  { %v284_v18 = vadd.f32 %v283_v3, %v277_v10  ;;  %v128_v20 = vsel %vm599_vm1, %v693_v57, %v701_v61  ;;  %vm145_vm2 = vcmp.eq.f32.partialorder %v625_v44, inf  ;;  %v148_v29 = vand.u32 2147483648, %v625_v44 }
  0x34   :  { %v138_v21 = vmul.f32 %v137_v59, %v137_v59  ;;  %v140_v27 = vmul.f32 %v139_v60, %v139_v60  ;;  %v304_v31 = vmul.f32 %v303_v63, %v303_v63  ;;  %vm147_vm3 = vcmp.eq.f32.partialorder %v625_v44, 0.0 }
  0x35   :  { %vm153_vm4 = vcmp.eq.f32.partialorder %v629_v6, inf  ;;  %v156_v32 = vand.u32 2147483648, %v629_v6  ;;  %v134_v16 = vsub.f32 %v128_v20, %v123_v17  ;;  %vm155_vm5 = vcmp.eq.f32.partialorder %v629_v6, 0.0 }
  0x36   :  { %v291_v34 = vadd.f32 %v290_v19, %v284_v18  ;;  %v141_v36 = vadd.f32 %v140_v27, %v138_v21  ;;  %vm164_vm6 = vcmp.eq.f32.partialorder %v650_v47, inf  ;;  %v167_v38 = vand.u32 2147483648, %v650_v47 }
  0x37   :  { %vm166_vm7 = vcmp.eq.f32.partialorder %v650_v47, 0.0  ;;  %vm172_vm8 = vcmp.eq.f32.partialorder %v659_v51, inf  ;;  %vm174_vm9 = vcmp.eq.f32.partialorder %v659_v51, 0.0  ;;  %v175_v13 = vand.u32 2147483648, %v659_v51 }
  0x38   :  { %v298_v25 = vadd.f32 %v297_v30, %v291_v34  ;;  %v26_v49 = vmul.f32 %v25_v14, %v25_v14  ;;  %v311_v53 = vmul.f32 %v310_v23, %v310_v23  ;;  %v135_v0 = vmul.f32 %v134_v16, %v134_v16 }
  0x39   :  { %v133_v10 = vsel %vm599_vm1, %v701_v61, %v693_v57  ;;  %v414_v59 = vmov 0.0  }
  0x3a   :  { %v305_v55 = vadd.f32 %v304_v31, %v298_v25  ;;  %v29_v2 = vadd.f32 %v28_v42, %v26_v49  ;;  %v321_v58 = vmul.f32 2.0, %v135_v0  ;;  %v343_v60 = vsel %vm14_vm10, 1.0, %v414_v59 }
  0x3b   :  { %v136_v62 = vmul.f32 %v133_v10, %v133_v10  ;;  %v342_v17 = vsel %vm13_vm0, 1.0, %v414_v59 }
  0x3c   :  { %v407_v28 = vpop.eup %406  ;;  %v312_v56 = vadd.f32 %v311_v53, %v305_v55  ;;  %v30_v11 = vmul.f32 %v343_v60, %v29_v2 }
  0x3d   :  { %v409_v22 = vpop.eup %408  ;;  %v144_v26 = vmul.f32 %v407_v28, %v625_v44 }
  0x3e   :  { %v152_v33 = vmul.f32 %v409_v22, %v629_v6  ;;  %v411_v35 = vpop.eup %410  ;;  %v326_v19 = vmul.f32 0.5, %v30_v11 }
  0x3f   :  { %v146_v37 = vsel %vm145_vm2, %v625_v44, %v144_v26  ;;  %v163_v41 = vmul.f32 %v411_v35, %v650_v47  ;;  %v413_v43 = vpop.eup %412 }
  0x40   :  { %v149_v39 = vsel %vm147_vm3, %v148_v29, %v146_v37  ;;  %v154_v40 = vsel %vm153_vm4, %v629_v6, %v152_v33  ;;  %v171_v7 = vmul.f32 %v413_v43, %v659_v51  ;;  %v399_v6 = vld [vmem:[%s754_s0 + $0x74] sm:$0xf] }
  0x41   :  { %v157_v4 = vsel %vm155_vm5, %v156_v32, %v154_v40  ;;  %v165_v45 = vsel %vm164_vm6, %v650_v47, %v163_v41  ;;  %v317_v47 = vsub.f32 %v399_v6, %v400_v46 }
  0x42   :  { %v158_v44 = vsub.f32 %v149_v39, %v157_v4  ;;  %v168_v48 = vsel %vm166_vm7, %v167_v38, %v165_v45  ;;  %v173_v5 = vsel %vm172_vm8, %v659_v51, %v171_v7 }
  0x43   :  { %v176_v52 = vsel %vm174_vm9, %v175_v13, %v173_v5  ;;  %v318_v51 = vmul.f32 %v317_v47, %v317_v47 }
  0x44   :  { %v159_v50 = vmul.f32 %v158_v44, %v158_v44  ;;  %v177_v54 = vsub.f32 %v168_v48, %v176_v52 }
  0x45   :  { %v319_v12 = vadd.f32 %v318_v51, %v312_v56 }
  0x46   :  { %v160_v8 = vadd.f32 %v159_v50, %v141_v36  ;;  %v178_v1 = vmul.f32 %v177_v54, %v177_v54 }
  0x48   :  { %v179_v3 = vadd.f32 %v178_v1, %v160_v8 }
  0x4a   :  { %v320_v63 = vmul.f32 5.0, %v179_v3 }
  0x4c   :  { %v322_v14 = vadd.f32 %v321_v58, %v320_v63 }
  0x4e   :  { %v323_v15 = vadd.f32 %v322_v14, %v136_v62 }
  0x50   :  { %v324_v18 = vadd.f32 %v323_v15, %v319_v12 }
  0x52   :  { %v325_v20 = vmul.f32 %v342_v17, %v324_v18 }
  0x54   :  { %v327_v24 = vadd.f32 %v326_v19, %v325_v20 }
  0x56   :  { %v329_v57 = vsel %vm328_vm11, %v327_v24, 0.0 }
  0x57   :  { %v330_v61 = vrot.slane %v329_v57, 4 }
  0x59   :  { %v331_v21 = vadd.f32 %v330_v61, %v329_v57 }
  0x5b   :  { %v332_v27 = vrot.slane %v331_v21, 2 }
  0x5d   :  { %v333_v23 = vadd.f32 %v332_v27, %v331_v21 }
  0x5f   :  { %v334_v28 = vrot.slane %v333_v23, 1 }
  0x61   :  { %v335_v29 = vadd.f32 %v334_v28, %v333_v23 }
  0x63   :  { %336 = vst [vmem:[%s756_s2] sm:$0x1] %v335_v29 }

</bundles_post_ra>
